<compile_context>
chip_gen: v5e
topology: v5e:2x2
jax: 0.10.0
libtpu: 0.0.40
codegen_flags: <defaults>
</compile_context>

<pallas_src>
import functools

import jax
import jax.numpy as jnp
from jax.experimental import pallas as pl
from jax.experimental.pallas import tpu as pltpu


def _convn_kernel(x_ref, w_ref, b_ref, o_ref, *scratch,
                  C, K, H, W, Hout, Wout, padding):
    # x_ref: (b_tile, C, H, W)        VMEM unpadded input tile
    # w_ref: (C*K*K,)                 SMEM flat weights (scalar reads)
    # b_ref: (1,)                     SMEM scalar bias
    # o_ref: (b_tile, Hout, Wout)     VMEM output tile
    # scratch: () if padding == 0 else (xp_ref,), xp_ref: (b_tile, C, Hp, Wp)
    b_tile = o_ref.shape[0]

    if padding > 0:
        xp_ref = scratch[0]
        # Zero the padded scratch, then drop the unpadded block into its
        # interior one channel at a time (bounded vreg pressure; a few tens of
        # KiB of VMEM traffic per grid step -- negligible vs. the HBM pad
        # round trip it replaces).  Re-zeroed every step on purpose: with
        # megacore grid sharding a core may never execute program_id == 0, so
        # an init-once trick would be unsafe.
        xp_ref[...] = jnp.zeros_like(xp_ref)
        for c in range(C):
            xp_ref[:, c, padding:padding + H, padding:padding + W] = (
                x_ref[:, c, :, :].astype(jnp.float32))
        src = xp_ref
    else:
        src = x_ref

    # Bias folded into the accumulator init (saves one VALU pass).
    acc = jnp.full((b_tile, Hout, Wout), b_ref[0], jnp.float32)

    # C*K slab loads; each slab is reused for the K lane-shift (kw) taps.
    # Static unroll is fine at C=4, K=3; for much larger C*K switch to
    # lax.fori_loop(..., unroll=True) so vreg live ranges stay bounded.
    for c in range(C):
        for kh in range(K):
            slab = src[:, c, kh:kh + Hout, :].astype(jnp.float32)   # (b_tile, Hout, Wp)
            for kw in range(K):
                w_s = w_ref[c * K * K + kh * K + kw]        # scalar from SMEM
                acc = acc + slab[:, :, kw:kw + Wout] * w_s  # VPU FMA

    o_ref[...] = acc.astype(o_ref.dtype)


def convolution_n(x, w, bias, padding=0, b_tile=None):
    """Pallas equivalent of ConvolutionN.forward (square spatial inputs)."""
    B, C, H, W = x.shape
    Cw, K, K2 = w.shape
    assert Cw == C and K == K2

    Hp, Wp = H + 2 * padding, W + 2 * padding
    Hout, Wout = Hp - K + 1, Wp - K + 1
    assert Hout > 0 and Wout > 0

    if b_tile is None:
        # >=2 grid steps whenever B >= 2 (v7x: 2 TensorCores), capped for VMEM,
        # and picked among divisors of B so no padded-batch rows are computed.
        cap = min(8, max(1, pl.cdiv(B, 2)))
        b_tile = next(d for d in range(cap, 0, -1) if B % d == 0)
    b_tile = max(1, min(int(b_tile), B))
    n_tiles = pl.cdiv(B, b_tile)
    Bp = n_tiles * b_tile

    if Bp != B:  # only reachable with a user-supplied, non-dividing b_tile
        x = jnp.pad(x, ((0, Bp - B), (0, 0), (0, 0), (0, 0)))

    w_flat = w.astype(jnp.float32).reshape(C * K * K)
    bias = bias.astype(jnp.float32).reshape(1)

    kernel = functools.partial(_convn_kernel, C=C, K=K, H=H, W=W,
                               Hout=Hout, Wout=Wout, padding=padding)

    scratch_shapes = []
    if padding > 0:
        scratch_shapes.append(pltpu.VMEM((b_tile, C, Hp, Wp), jnp.float32))

    in_bytes = jnp.dtype(x.dtype).itemsize
    cost = pl.CostEstimate(
        flops=2 * Bp * C * K * K * Hout * Wout,
        transcendentals=0,
        bytes_accessed=(Bp * C * H * W * in_bytes
                        + Bp * Hout * Wout * 4
                        + (C * K * K + 1) * 4),
    )

    out = pl.pallas_call(
        kernel,
        out_shape=jax.ShapeDtypeStruct((Bp, Hout, Wout), jnp.float32),
        grid=(n_tiles,),
        in_specs=[
            # Last two block dims equal the full (H, W) array dims.
            pl.BlockSpec((b_tile, C, H, W), lambda i: (i, 0, 0, 0)),
            # Flat weights and bias live in SMEM (scalar path).
            pl.BlockSpec(memory_space=pltpu.SMEM),
            pl.BlockSpec(memory_space=pltpu.SMEM),
        ],
        out_specs=pl.BlockSpec((b_tile, Hout, Wout), lambda i: (i, 0, 0)),
        scratch_shapes=scratch_shapes,
        compiler_params=pltpu.CompilerParams(
            dimension_semantics=("parallel",)),
        cost_estimate=cost,
    )(x, w_flat, bias)

    return out if Bp == B else out[:B]


def _reference(x, w, bias, padding):
    # Pure-JAX reference: conv with a single output channel, NCHW.
    out = jax.lax.conv_general_dilated(
        x, w[None, :, :, :],  # (O=1, I=C, K, K)
        window_strides=(1, 1),
        padding=[(padding, padding), (padding, padding)],
        dimension_numbers=("NCHW", "OIHW", "NCHW"),
    )
    return out[:, 0, :, :] + bias[0]


if __name__ == "__main__":
    # Small shapes consistent with the module: batch=2, channels=4, spatial=16.
    B, C, H, W = 2, 4, 16, 16
    K = 3
    padding = 1

    key = jax.random.PRNGKey(0)
    kx, kw_, kb = jax.random.split(key, 3)

    x = jax.random.normal(kx, (B, C, H, W), dtype=jnp.float32)
    scale = (C * K) ** (-0.5)
    w = jax.random.normal(kw_, (C, K, K), dtype=jnp.float32) * scale
    bias = jax.random.normal(kb, (1,), dtype=jnp.float32) * scale

    out = convolution_n(x, w, bias, padding=padding)
    out = jax.block_until_ready(out)

    ref = _reference(x, w, bias, padding)
    Hout = H + 2 * padding - K + 1
    Wout = W + 2 * padding - K + 1
    assert out.shape == (B, Hout, Wout), out.shape
    assert jnp.allclose(out, ref, atol=1e-5, rtol=1e-5), float(
        jnp.max(jnp.abs(out - ref)))

    print("KERNEL_OK")
</pallas_src>

<mosaic_0001>
module attributes {stable_mosaic.version = 11 : i64} {
  func.func @_convn_kernel(%arg0: i32, %arg1: memref<1x4x16x16xf32, #tpu.memory_space<vmem>>, %arg2: memref<36xf32, #tpu.memory_space<smem>>, %arg3: memref<1xf32, #tpu.memory_space<smem>>, %arg4: memref<1x16x16xf32, #tpu.memory_space<vmem>>, %arg5: memref<1x4x18x18xf32, #tpu.memory_space<vmem>>) attributes {dimension_semantics = [#tpu.dimension_semantics<parallel>], iteration_bounds = array<i64: 2>, scalar_prefetch = 0 : i64, scratch_operands = 1 : i64, tpu.core_type = #tpu.core_type<tc>, window_params = [{transform_indices = @transform_0, window_bounds = array<i64: 1, 4, 16, 16>}, {transform_indices = @transform_1, window_bounds = array<i64: 36>}, {transform_indices = @transform_2, window_bounds = array<i64: 1>}, {transform_indices = @transform_3, window_bounds = array<i64: 1, 16, 16>}]} {
    %cst = arith.constant 0.000000e+00 : f32
    %0 = vector.broadcast %cst : f32 to vector<1x4x18x18xf32>
    %c0 = arith.constant 0 : index
    %c0_0 = arith.constant 0 : index
    %c0_1 = arith.constant 0 : index
    %c0_2 = arith.constant 0 : index
    %1 = vector.load %arg5[%c0, %c0_0, %c0_1, %c0_2] : memref<1x4x18x18xf32, #tpu.memory_space<vmem>>, vector<1x4x18x18xf32>
    tpu.vector_store %arg5[%c0, %c0_0, %c0_1, %c0_2], %0 {strides = array<i32>} : memref<1x4x18x18xf32, #tpu.memory_space<vmem>>, vector<1x4x18x18xf32>,
    %c0_3 = arith.constant 0 : index
    %c0_4 = arith.constant 0 : index
    %c0_5 = arith.constant 0 : index
    %c0_6 = arith.constant 0 : index
    %2 = vector.load %arg1[%c0_3, %c0_4, %c0_5, %c0_6] : memref<1x4x16x16xf32, #tpu.memory_space<vmem>>, vector<1x1x16x16xf32>
    %3 = vector.shape_cast %2 : vector<1x1x16x16xf32> to vector<1x16x16xf32>
    %c0_7 = arith.constant 0 : index
    %c0_8 = arith.constant 0 : index
    %c1 = arith.constant 1 : index
    %c1_9 = arith.constant 1 : index
    %4 = vector.load %arg5[%c0_7, %c0_8, %c1, %c1_9] : memref<1x4x18x18xf32, #tpu.memory_space<vmem>>, vector<1x1x16x16xf32>
    %5 = vector.shape_cast %4 : vector<1x1x16x16xf32> to vector<1x16x16xf32>
    %6 = vector.shape_cast %3 : vector<1x16x16xf32> to vector<1x1x16x16xf32>
    tpu.vector_store %arg5[%c0_7, %c0_8, %c1, %c1_9], %6 {strides = array<i32>} : memref<1x4x18x18xf32, #tpu.memory_space<vmem>>, vector<1x1x16x16xf32>,
    %c0_10 = arith.constant 0 : index
    %c1_11 = arith.constant 1 : index
    %c0_12 = arith.constant 0 : index
    %c0_13 = arith.constant 0 : index
    %7 = vector.load %arg1[%c0_10, %c1_11, %c0_12, %c0_13] : memref<1x4x16x16xf32, #tpu.memory_space<vmem>>, vector<1x1x16x16xf32>
    %8 = vector.shape_cast %7 : vector<1x1x16x16xf32> to vector<1x16x16xf32>
    %c0_14 = arith.constant 0 : index
    %c1_15 = arith.constant 1 : index
    %c1_16 = arith.constant 1 : index
    %c1_17 = arith.constant 1 : index
    %9 = vector.load %arg5[%c0_14, %c1_15, %c1_16, %c1_17] : memref<1x4x18x18xf32, #tpu.memory_space<vmem>>, vector<1x1x16x16xf32>
    %10 = vector.shape_cast %9 : vector<1x1x16x16xf32> to vector<1x16x16xf32>
    %11 = vector.shape_cast %8 : vector<1x16x16xf32> to vector<1x1x16x16xf32>
    tpu.vector_store %arg5[%c0_14, %c1_15, %c1_16, %c1_17], %11 {strides = array<i32>} : memref<1x4x18x18xf32, #tpu.memory_space<vmem>>, vector<1x1x16x16xf32>,
    %c0_18 = arith.constant 0 : index
    %c2 = arith.constant 2 : index
    %c0_19 = arith.constant 0 : index
    %c0_20 = arith.constant 0 : index
    %12 = vector.load %arg1[%c0_18, %c2, %c0_19, %c0_20] : memref<1x4x16x16xf32, #tpu.memory_space<vmem>>, vector<1x1x16x16xf32>
    %13 = vector.shape_cast %12 : vector<1x1x16x16xf32> to vector<1x16x16xf32>
    %c0_21 = arith.constant 0 : index
    %c2_22 = arith.constant 2 : index
    %c1_23 = arith.constant 1 : index
    %c1_24 = arith.constant 1 : index
    %14 = vector.load %arg5[%c0_21, %c2_22, %c1_23, %c1_24] : memref<1x4x18x18xf32, #tpu.memory_space<vmem>>, vector<1x1x16x16xf32>
    %15 = vector.shape_cast %14 : vector<1x1x16x16xf32> to vector<1x16x16xf32>
    %16 = vector.shape_cast %13 : vector<1x16x16xf32> to vector<1x1x16x16xf32>
    tpu.vector_store %arg5[%c0_21, %c2_22, %c1_23, %c1_24], %16 {strides = array<i32>} : memref<1x4x18x18xf32, #tpu.memory_space<vmem>>, vector<1x1x16x16xf32>,
    %c0_25 = arith.constant 0 : index
    %c3 = arith.constant 3 : index
    %c0_26 = arith.constant 0 : index
    %c0_27 = arith.constant 0 : index
    %17 = vector.load %arg1[%c0_25, %c3, %c0_26, %c0_27] : memref<1x4x16x16xf32, #tpu.memory_space<vmem>>, vector<1x1x16x16xf32>
    %18 = vector.shape_cast %17 : vector<1x1x16x16xf32> to vector<1x16x16xf32>
    %c0_28 = arith.constant 0 : index
    %c3_29 = arith.constant 3 : index
    %c1_30 = arith.constant 1 : index
    %c1_31 = arith.constant 1 : index
    %19 = vector.load %arg5[%c0_28, %c3_29, %c1_30, %c1_31] : memref<1x4x18x18xf32, #tpu.memory_space<vmem>>, vector<1x1x16x16xf32>
    %20 = vector.shape_cast %19 : vector<1x1x16x16xf32> to vector<1x16x16xf32>
    %21 = vector.shape_cast %18 : vector<1x16x16xf32> to vector<1x1x16x16xf32>
    tpu.vector_store %arg5[%c0_28, %c3_29, %c1_30, %c1_31], %21 {strides = array<i32>} : memref<1x4x18x18xf32, #tpu.memory_space<vmem>>, vector<1x1x16x16xf32>,
    %c0_32 = arith.constant 0 : index
    %22 = memref.load %arg3[%c0_32] : memref<1xf32, #tpu.memory_space<smem>>
    %23 = vector.broadcast %22 : f32 to vector<1x16x16xf32>
    %c0_33 = arith.constant 0 : index
    %c0_34 = arith.constant 0 : index
    %c0_35 = arith.constant 0 : index
    %c0_36 = arith.constant 0 : index
    %24 = vector.load %arg5[%c0_33, %c0_34, %c0_35, %c0_36] : memref<1x4x18x18xf32, #tpu.memory_space<vmem>>, vector<1x1x16x18xf32>
    %25 = vector.shape_cast %24 : vector<1x1x16x18xf32> to vector<1x16x18xf32>
    %c0_37 = arith.constant 0 : index
    %26 = memref.load %arg2[%c0_37] : memref<36xf32, #tpu.memory_space<smem>>
    %27 = vector.extract_strided_slice %25 {offsets = [0, 0, 0], sizes = [1, 16, 16], strides = [1, 1, 1]} : vector<1x16x18xf32> to vector<1x16x16xf32>
    %28 = vector.broadcast %26 : f32 to vector<1x16x16xf32>
    %29 = arith.mulf %27, %28 : vector<1x16x16xf32>
    %30 = arith.addf %23, %29 : vector<1x16x16xf32>
    %c1_38 = arith.constant 1 : index
    %31 = memref.load %arg2[%c1_38] : memref<36xf32, #tpu.memory_space<smem>>
    %32 = vector.extract_strided_slice %25 {offsets = [0, 0, 1], sizes = [1, 16, 16], strides = [1, 1, 1]} : vector<1x16x18xf32> to vector<1x16x16xf32>
    %33 = vector.broadcast %31 : f32 to vector<1x16x16xf32>
    %34 = arith.mulf %32, %33 : vector<1x16x16xf32>
    %35 = arith.addf %30, %34 : vector<1x16x16xf32>
    %c2_39 = arith.constant 2 : index
    %36 = memref.load %arg2[%c2_39] : memref<36xf32, #tpu.memory_space<smem>>
    %37 = vector.extract_strided_slice %25 {offsets = [0, 0, 2], sizes = [1, 16, 16], strides = [1, 1, 1]} : vector<1x16x18xf32> to vector<1x16x16xf32>
    %38 = vector.broadcast %36 : f32 to vector<1x16x16xf32>
    %39 = arith.mulf %37, %38 : vector<1x16x16xf32>
    %40 = arith.addf %35, %39 : vector<1x16x16xf32>
    %c0_40 = arith.constant 0 : index
    %c0_41 = arith.constant 0 : index
    %c1_42 = arith.constant 1 : index
    %c0_43 = arith.constant 0 : index
    %41 = vector.load %arg5[%c0_40, %c0_41, %c1_42, %c0_43] : memref<1x4x18x18xf32, #tpu.memory_space<vmem>>, vector<1x1x16x18xf32>
    %42 = vector.shape_cast %41 : vector<1x1x16x18xf32> to vector<1x16x18xf32>
    %c3_44 = arith.constant 3 : index
    %43 = memref.load %arg2[%c3_44] : memref<36xf32, #tpu.memory_space<smem>>
    %44 = vector.extract_strided_slice %42 {offsets = [0, 0, 0], sizes = [1, 16, 16], strides = [1, 1, 1]} : vector<1x16x18xf32> to vector<1x16x16xf32>
    %45 = vector.broadcast %43 : f32 to vector<1x16x16xf32>
    %46 = arith.mulf %44, %45 : vector<1x16x16xf32>
    %47 = arith.addf %40, %46 : vector<1x16x16xf32>
    %c4 = arith.constant 4 : index
    %48 = memref.load %arg2[%c4] : memref<36xf32, #tpu.memory_space<smem>>
    %49 = vector.extract_strided_slice %42 {offsets = [0, 0, 1], sizes = [1, 16, 16], strides = [1, 1, 1]} : vector<1x16x18xf32> to vector<1x16x16xf32>
    %50 = vector.broadcast %48 : f32 to vector<1x16x16xf32>
    %51 = arith.mulf %49, %50 : vector<1x16x16xf32>
    %52 = arith.addf %47, %51 : vector<1x16x16xf32>
    %c5 = arith.constant 5 : index
    %53 = memref.load %arg2[%c5] : memref<36xf32, #tpu.memory_space<smem>>
    %54 = vector.extract_strided_slice %42 {offsets = [0, 0, 2], sizes = [1, 16, 16], strides = [1, 1, 1]} : vector<1x16x18xf32> to vector<1x16x16xf32>
    %55 = vector.broadcast %53 : f32 to vector<1x16x16xf32>
    %56 = arith.mulf %54, %55 : vector<1x16x16xf32>
    %57 = arith.addf %52, %56 : vector<1x16x16xf32>
    %c0_45 = arith.constant 0 : index
    %c0_46 = arith.constant 0 : index
    %c2_47 = arith.constant 2 : index
    %c0_48 = arith.constant 0 : index
    %58 = vector.load %arg5[%c0_45, %c0_46, %c2_47, %c0_48] : memref<1x4x18x18xf32, #tpu.memory_space<vmem>>, vector<1x1x16x18xf32>
    %59 = vector.shape_cast %58 : vector<1x1x16x18xf32> to vector<1x16x18xf32>
    %c6 = arith.constant 6 : index
    %60 = memref.load %arg2[%c6] : memref<36xf32, #tpu.memory_space<smem>>
    %61 = vector.extract_strided_slice %59 {offsets = [0, 0, 0], sizes = [1, 16, 16], strides = [1, 1, 1]} : vector<1x16x18xf32> to vector<1x16x16xf32>
    %62 = vector.broadcast %60 : f32 to vector<1x16x16xf32>
    %63 = arith.mulf %61, %62 : vector<1x16x16xf32>
    %64 = arith.addf %57, %63 : vector<1x16x16xf32>
    %c7 = arith.constant 7 : index
    %65 = memref.load %arg2[%c7] : memref<36xf32, #tpu.memory_space<smem>>
    %66 = vector.extract_strided_slice %59 {offsets = [0, 0, 1], sizes = [1, 16, 16], strides = [1, 1, 1]} : vector<1x16x18xf32> to vector<1x16x16xf32>
    %67 = vector.broadcast %65 : f32 to vector<1x16x16xf32>
    %68 = arith.mulf %66, %67 : vector<1x16x16xf32>
    %69 = arith.addf %64, %68 : vector<1x16x16xf32>
    %c8 = arith.constant 8 : index
    %70 = memref.load %arg2[%c8] : memref<36xf32, #tpu.memory_space<smem>>
    %71 = vector.extract_strided_slice %59 {offsets = [0, 0, 2], sizes = [1, 16, 16], strides = [1, 1, 1]} : vector<1x16x18xf32> to vector<1x16x16xf32>
    %72 = vector.broadcast %70 : f32 to vector<1x16x16xf32>
    %73 = arith.mulf %71, %72 : vector<1x16x16xf32>
    %74 = arith.addf %69, %73 : vector<1x16x16xf32>
    %c0_49 = arith.constant 0 : index
    %c1_50 = arith.constant 1 : index
    %c0_51 = arith.constant 0 : index
    %c0_52 = arith.constant 0 : index
    %75 = vector.load %arg5[%c0_49, %c1_50, %c0_51, %c0_52] : memref<1x4x18x18xf32, #tpu.memory_space<vmem>>, vector<1x1x16x18xf32>
    %76 = vector.shape_cast %75 : vector<1x1x16x18xf32> to vector<1x16x18xf32>
    %c9 = arith.constant 9 : index
    %77 = memref.load %arg2[%c9] : memref<36xf32, #tpu.memory_space<smem>>
    %78 = vector.extract_strided_slice %76 {offsets = [0, 0, 0], sizes = [1, 16, 16], strides = [1, 1, 1]} : vector<1x16x18xf32> to vector<1x16x16xf32>
    %79 = vector.broadcast %77 : f32 to vector<1x16x16xf32>
    %80 = arith.mulf %78, %79 : vector<1x16x16xf32>
    %81 = arith.addf %74, %80 : vector<1x16x16xf32>
    %c10 = arith.constant 10 : index
    %82 = memref.load %arg2[%c10] : memref<36xf32, #tpu.memory_space<smem>>
    %83 = vector.extract_strided_slice %76 {offsets = [0, 0, 1], sizes = [1, 16, 16], strides = [1, 1, 1]} : vector<1x16x18xf32> to vector<1x16x16xf32>
    %84 = vector.broadcast %82 : f32 to vector<1x16x16xf32>
    %85 = arith.mulf %83, %84 : vector<1x16x16xf32>
    %86 = arith.addf %81, %85 : vector<1x16x16xf32>
    %c11 = arith.constant 11 : index
    %87 = memref.load %arg2[%c11] : memref<36xf32, #tpu.memory_space<smem>>
    %88 = vector.extract_strided_slice %76 {offsets = [0, 0, 2], sizes = [1, 16, 16], strides = [1, 1, 1]} : vector<1x16x18xf32> to vector<1x16x16xf32>
    %89 = vector.broadcast %87 : f32 to vector<1x16x16xf32>
    %90 = arith.mulf %88, %89 : vector<1x16x16xf32>
    %91 = arith.addf %86, %90 : vector<1x16x16xf32>
    %c0_53 = arith.constant 0 : index
    %c1_54 = arith.constant 1 : index
    %c1_55 = arith.constant 1 : index
    %c0_56 = arith.constant 0 : index
    %92 = vector.load %arg5[%c0_53, %c1_54, %c1_55, %c0_56] : memref<1x4x18x18xf32, #tpu.memory_space<vmem>>, vector<1x1x16x18xf32>
    %93 = vector.shape_cast %92 : vector<1x1x16x18xf32> to vector<1x16x18xf32>
    %c12 = arith.constant 12 : index
    %94 = memref.load %arg2[%c12] : memref<36xf32, #tpu.memory_space<smem>>
    %95 = vector.extract_strided_slice %93 {offsets = [0, 0, 0], sizes = [1, 16, 16], strides = [1, 1, 1]} : vector<1x16x18xf32> to vector<1x16x16xf32>
    %96 = vector.broadcast %94 : f32 to vector<1x16x16xf32>
    %97 = arith.mulf %95, %96 : vector<1x16x16xf32>
    %98 = arith.addf %91, %97 : vector<1x16x16xf32>
    %c13 = arith.constant 13 : index
    %99 = memref.load %arg2[%c13] : memref<36xf32, #tpu.memory_space<smem>>
    %100 = vector.extract_strided_slice %93 {offsets = [0, 0, 1], sizes = [1, 16, 16], strides = [1, 1, 1]} : vector<1x16x18xf32> to vector<1x16x16xf32>
    %101 = vector.broadcast %99 : f32 to vector<1x16x16xf32>
    %102 = arith.mulf %100, %101 : vector<1x16x16xf32>
    %103 = arith.addf %98, %102 : vector<1x16x16xf32>
    %c14 = arith.constant 14 : index
    %104 = memref.load %arg2[%c14] : memref<36xf32, #tpu.memory_space<smem>>
    %105 = vector.extract_strided_slice %93 {offsets = [0, 0, 2], sizes = [1, 16, 16], strides = [1, 1, 1]} : vector<1x16x18xf32> to vector<1x16x16xf32>
    %106 = vector.broadcast %104 : f32 to vector<1x16x16xf32>
    %107 = arith.mulf %105, %106 : vector<1x16x16xf32>
    %108 = arith.addf %103, %107 : vector<1x16x16xf32>
    %c0_57 = arith.constant 0 : index
    %c1_58 = arith.constant 1 : index
    %c2_59 = arith.constant 2 : index
    %c0_60 = arith.constant 0 : index
    %109 = vector.load %arg5[%c0_57, %c1_58, %c2_59, %c0_60] : memref<1x4x18x18xf32, #tpu.memory_space<vmem>>, vector<1x1x16x18xf32>
    %110 = vector.shape_cast %109 : vector<1x1x16x18xf32> to vector<1x16x18xf32>
    %c15 = arith.constant 15 : index
    %111 = memref.load %arg2[%c15] : memref<36xf32, #tpu.memory_space<smem>>
    %112 = vector.extract_strided_slice %110 {offsets = [0, 0, 0], sizes = [1, 16, 16], strides = [1, 1, 1]} : vector<1x16x18xf32> to vector<1x16x16xf32>
    %113 = vector.broadcast %111 : f32 to vector<1x16x16xf32>
    %114 = arith.mulf %112, %113 : vector<1x16x16xf32>
    %115 = arith.addf %108, %114 : vector<1x16x16xf32>
    %c16 = arith.constant 16 : index
    %116 = memref.load %arg2[%c16] : memref<36xf32, #tpu.memory_space<smem>>
    %117 = vector.extract_strided_slice %110 {offsets = [0, 0, 1], sizes = [1, 16, 16], strides = [1, 1, 1]} : vector<1x16x18xf32> to vector<1x16x16xf32>
    %118 = vector.broadcast %116 : f32 to vector<1x16x16xf32>
    %119 = arith.mulf %117, %118 : vector<1x16x16xf32>
    %120 = arith.addf %115, %119 : vector<1x16x16xf32>
    %c17 = arith.constant 17 : index
    %121 = memref.load %arg2[%c17] : memref<36xf32, #tpu.memory_space<smem>>
    %122 = vector.extract_strided_slice %110 {offsets = [0, 0, 2], sizes = [1, 16, 16], strides = [1, 1, 1]} : vector<1x16x18xf32> to vector<1x16x16xf32>
    %123 = vector.broadcast %121 : f32 to vector<1x16x16xf32>
    %124 = arith.mulf %122, %123 : vector<1x16x16xf32>
    %125 = arith.addf %120, %124 : vector<1x16x16xf32>
    %c0_61 = arith.constant 0 : index
    %c2_62 = arith.constant 2 : index
    %c0_63 = arith.constant 0 : index
    %c0_64 = arith.constant 0 : index
    %126 = vector.load %arg5[%c0_61, %c2_62, %c0_63, %c0_64] : memref<1x4x18x18xf32, #tpu.memory_space<vmem>>, vector<1x1x16x18xf32>
    %127 = vector.shape_cast %126 : vector<1x1x16x18xf32> to vector<1x16x18xf32>
    %c18 = arith.constant 18 : index
    %128 = memref.load %arg2[%c18] : memref<36xf32, #tpu.memory_space<smem>>
    %129 = vector.extract_strided_slice %127 {offsets = [0, 0, 0], sizes = [1, 16, 16], strides = [1, 1, 1]} : vector<1x16x18xf32> to vector<1x16x16xf32>
    %130 = vector.broadcast %128 : f32 to vector<1x16x16xf32>
    %131 = arith.mulf %129, %130 : vector<1x16x16xf32>
    %132 = arith.addf %125, %131 : vector<1x16x16xf32>
    %c19 = arith.constant 19 : index
    %133 = memref.load %arg2[%c19] : memref<36xf32, #tpu.memory_space<smem>>
    %134 = vector.extract_strided_slice %127 {offsets = [0, 0, 1], sizes = [1, 16, 16], strides = [1, 1, 1]} : vector<1x16x18xf32> to vector<1x16x16xf32>
    %135 = vector.broadcast %133 : f32 to vector<1x16x16xf32>
    %136 = arith.mulf %134, %135 : vector<1x16x16xf32>
    %137 = arith.addf %132, %136 : vector<1x16x16xf32>
    %c20 = arith.constant 20 : index
    %138 = memref.load %arg2[%c20] : memref<36xf32, #tpu.memory_space<smem>>
    %139 = vector.extract_strided_slice %127 {offsets = [0, 0, 2], sizes = [1, 16, 16], strides = [1, 1, 1]} : vector<1x16x18xf32> to vector<1x16x16xf32>
    %140 = vector.broadcast %138 : f32 to vector<1x16x16xf32>
    %141 = arith.mulf %139, %140 : vector<1x16x16xf32>
    %142 = arith.addf %137, %141 : vector<1x16x16xf32>
    %c0_65 = arith.constant 0 : index
    %c2_66 = arith.constant 2 : index
    %c1_67 = arith.constant 1 : index
    %c0_68 = arith.constant 0 : index
    %143 = vector.load %arg5[%c0_65, %c2_66, %c1_67, %c0_68] : memref<1x4x18x18xf32, #tpu.memory_space<vmem>>, vector<1x1x16x18xf32>
    %144 = vector.shape_cast %143 : vector<1x1x16x18xf32> to vector<1x16x18xf32>
    %c21 = arith.constant 21 : index
    %145 = memref.load %arg2[%c21] : memref<36xf32, #tpu.memory_space<smem>>
    %146 = vector.extract_strided_slice %144 {offsets = [0, 0, 0], sizes = [1, 16, 16], strides = [1, 1, 1]} : vector<1x16x18xf32> to vector<1x16x16xf32>
    %147 = vector.broadcast %145 : f32 to vector<1x16x16xf32>
    %148 = arith.mulf %146, %147 : vector<1x16x16xf32>
    %149 = arith.addf %142, %148 : vector<1x16x16xf32>
    %c22 = arith.constant 22 : index
    %150 = memref.load %arg2[%c22] : memref<36xf32, #tpu.memory_space<smem>>
    %151 = vector.extract_strided_slice %144 {offsets = [0, 0, 1], sizes = [1, 16, 16], strides = [1, 1, 1]} : vector<1x16x18xf32> to vector<1x16x16xf32>
    %152 = vector.broadcast %150 : f32 to vector<1x16x16xf32>
    %153 = arith.mulf %151, %152 : vector<1x16x16xf32>
    %154 = arith.addf %149, %153 : vector<1x16x16xf32>
    %c23 = arith.constant 23 : index
    %155 = memref.load %arg2[%c23] : memref<36xf32, #tpu.memory_space<smem>>
    %156 = vector.extract_strided_slice %144 {offsets = [0, 0, 2], sizes = [1, 16, 16], strides = [1, 1, 1]} : vector<1x16x18xf32> to vector<1x16x16xf32>
    %157 = vector.broadcast %155 : f32 to vector<1x16x16xf32>
    %158 = arith.mulf %156, %157 : vector<1x16x16xf32>
    %159 = arith.addf %154, %158 : vector<1x16x16xf32>
    %c0_69 = arith.constant 0 : index
    %c2_70 = arith.constant 2 : index
    %c2_71 = arith.constant 2 : index
    %c0_72 = arith.constant 0 : index
    %160 = vector.load %arg5[%c0_69, %c2_70, %c2_71, %c0_72] : memref<1x4x18x18xf32, #tpu.memory_space<vmem>>, vector<1x1x16x18xf32>
    %161 = vector.shape_cast %160 : vector<1x1x16x18xf32> to vector<1x16x18xf32>
    %c24 = arith.constant 24 : index
    %162 = memref.load %arg2[%c24] : memref<36xf32, #tpu.memory_space<smem>>
    %163 = vector.extract_strided_slice %161 {offsets = [0, 0, 0], sizes = [1, 16, 16], strides = [1, 1, 1]} : vector<1x16x18xf32> to vector<1x16x16xf32>
    %164 = vector.broadcast %162 : f32 to vector<1x16x16xf32>
    %165 = arith.mulf %163, %164 : vector<1x16x16xf32>
    %166 = arith.addf %159, %165 : vector<1x16x16xf32>
    %c25 = arith.constant 25 : index
    %167 = memref.load %arg2[%c25] : memref<36xf32, #tpu.memory_space<smem>>
    %168 = vector.extract_strided_slice %161 {offsets = [0, 0, 1], sizes = [1, 16, 16], strides = [1, 1, 1]} : vector<1x16x18xf32> to vector<1x16x16xf32>
    %169 = vector.broadcast %167 : f32 to vector<1x16x16xf32>
    %170 = arith.mulf %168, %169 : vector<1x16x16xf32>
    %171 = arith.addf %166, %170 : vector<1x16x16xf32>
    %c26 = arith.constant 26 : index
    %172 = memref.load %arg2[%c26] : memref<36xf32, #tpu.memory_space<smem>>
    %173 = vector.extract_strided_slice %161 {offsets = [0, 0, 2], sizes = [1, 16, 16], strides = [1, 1, 1]} : vector<1x16x18xf32> to vector<1x16x16xf32>
    %174 = vector.broadcast %172 : f32 to vector<1x16x16xf32>
    %175 = arith.mulf %173, %174 : vector<1x16x16xf32>
    %176 = arith.addf %171, %175 : vector<1x16x16xf32>
    %c0_73 = arith.constant 0 : index
    %c3_74 = arith.constant 3 : index
    %c0_75 = arith.constant 0 : index
    %c0_76 = arith.constant 0 : index
    %177 = vector.load %arg5[%c0_73, %c3_74, %c0_75, %c0_76] : memref<1x4x18x18xf32, #tpu.memory_space<vmem>>, vector<1x1x16x18xf32>
    %178 = vector.shape_cast %177 : vector<1x1x16x18xf32> to vector<1x16x18xf32>
    %c27 = arith.constant 27 : index
    %179 = memref.load %arg2[%c27] : memref<36xf32, #tpu.memory_space<smem>>
    %180 = vector.extract_strided_slice %178 {offsets = [0, 0, 0], sizes = [1, 16, 16], strides = [1, 1, 1]} : vector<1x16x18xf32> to vector<1x16x16xf32>
    %181 = vector.broadcast %179 : f32 to vector<1x16x16xf32>
    %182 = arith.mulf %180, %181 : vector<1x16x16xf32>
    %183 = arith.addf %176, %182 : vector<1x16x16xf32>
    %c28 = arith.constant 28 : index
    %184 = memref.load %arg2[%c28] : memref<36xf32, #tpu.memory_space<smem>>
    %185 = vector.extract_strided_slice %178 {offsets = [0, 0, 1], sizes = [1, 16, 16], strides = [1, 1, 1]} : vector<1x16x18xf32> to vector<1x16x16xf32>
    %186 = vector.broadcast %184 : f32 to vector<1x16x16xf32>
    %187 = arith.mulf %185, %186 : vector<1x16x16xf32>
    %188 = arith.addf %183, %187 : vector<1x16x16xf32>
    %c29 = arith.constant 29 : index
    %189 = memref.load %arg2[%c29] : memref<36xf32, #tpu.memory_space<smem>>
    %190 = vector.extract_strided_slice %178 {offsets = [0, 0, 2], sizes = [1, 16, 16], strides = [1, 1, 1]} : vector<1x16x18xf32> to vector<1x16x16xf32>
    %191 = vector.broadcast %189 : f32 to vector<1x16x16xf32>
    %192 = arith.mulf %190, %191 : vector<1x16x16xf32>
    %193 = arith.addf %188, %192 : vector<1x16x16xf32>
    %c0_77 = arith.constant 0 : index
    %c3_78 = arith.constant 3 : index
    %c1_79 = arith.constant 1 : index
    %c0_80 = arith.constant 0 : index
    %194 = vector.load %arg5[%c0_77, %c3_78, %c1_79, %c0_80] : memref<1x4x18x18xf32, #tpu.memory_space<vmem>>, vector<1x1x16x18xf32>
    %195 = vector.shape_cast %194 : vector<1x1x16x18xf32> to vector<1x16x18xf32>
    %c30 = arith.constant 30 : index
    %196 = memref.load %arg2[%c30] : memref<36xf32, #tpu.memory_space<smem>>
    %197 = vector.extract_strided_slice %195 {offsets = [0, 0, 0], sizes = [1, 16, 16], strides = [1, 1, 1]} : vector<1x16x18xf32> to vector<1x16x16xf32>
    %198 = vector.broadcast %196 : f32 to vector<1x16x16xf32>
    %199 = arith.mulf %197, %198 : vector<1x16x16xf32>
    %200 = arith.addf %193, %199 : vector<1x16x16xf32>
    %c31 = arith.constant 31 : index
    %201 = memref.load %arg2[%c31] : memref<36xf32, #tpu.memory_space<smem>>
    %202 = vector.extract_strided_slice %195 {offsets = [0, 0, 1], sizes = [1, 16, 16], strides = [1, 1, 1]} : vector<1x16x18xf32> to vector<1x16x16xf32>
    %203 = vector.broadcast %201 : f32 to vector<1x16x16xf32>
    %204 = arith.mulf %202, %203 : vector<1x16x16xf32>
    %205 = arith.addf %200, %204 : vector<1x16x16xf32>
    %c32 = arith.constant 32 : index
    %206 = memref.load %arg2[%c32] : memref<36xf32, #tpu.memory_space<smem>>
    %207 = vector.extract_strided_slice %195 {offsets = [0, 0, 2], sizes = [1, 16, 16], strides = [1, 1, 1]} : vector<1x16x18xf32> to vector<1x16x16xf32>
    %208 = vector.broadcast %206 : f32 to vector<1x16x16xf32>
    %209 = arith.mulf %207, %208 : vector<1x16x16xf32>
    %210 = arith.addf %205, %209 : vector<1x16x16xf32>
    %c0_81 = arith.constant 0 : index
    %c3_82 = arith.constant 3 : index
    %c2_83 = arith.constant 2 : index
    %c0_84 = arith.constant 0 : index
    %211 = vector.load %arg5[%c0_81, %c3_82, %c2_83, %c0_84] : memref<1x4x18x18xf32, #tpu.memory_space<vmem>>, vector<1x1x16x18xf32>
    %212 = vector.shape_cast %211 : vector<1x1x16x18xf32> to vector<1x16x18xf32>
    %c33 = arith.constant 33 : index
    %213 = memref.load %arg2[%c33] : memref<36xf32, #tpu.memory_space<smem>>
    %214 = vector.extract_strided_slice %212 {offsets = [0, 0, 0], sizes = [1, 16, 16], strides = [1, 1, 1]} : vector<1x16x18xf32> to vector<1x16x16xf32>
    %215 = vector.broadcast %213 : f32 to vector<1x16x16xf32>
    %216 = arith.mulf %214, %215 : vector<1x16x16xf32>
    %217 = arith.addf %210, %216 : vector<1x16x16xf32>
    %c34 = arith.constant 34 : index
    %218 = memref.load %arg2[%c34] : memref<36xf32, #tpu.memory_space<smem>>
    %219 = vector.extract_strided_slice %212 {offsets = [0, 0, 1], sizes = [1, 16, 16], strides = [1, 1, 1]} : vector<1x16x18xf32> to vector<1x16x16xf32>
    %220 = vector.broadcast %218 : f32 to vector<1x16x16xf32>
    %221 = arith.mulf %219, %220 : vector<1x16x16xf32>
    %222 = arith.addf %217, %221 : vector<1x16x16xf32>
    %c35 = arith.constant 35 : index
    %223 = memref.load %arg2[%c35] : memref<36xf32, #tpu.memory_space<smem>>
    %224 = vector.extract_strided_slice %212 {offsets = [0, 0, 2], sizes = [1, 16, 16], strides = [1, 1, 1]} : vector<1x16x18xf32> to vector<1x16x16xf32>
    %225 = vector.broadcast %223 : f32 to vector<1x16x16xf32>
    %226 = arith.mulf %224, %225 : vector<1x16x16xf32>
    %227 = arith.addf %222, %226 : vector<1x16x16xf32>
    %c0_85 = arith.constant 0 : index
    %c0_86 = arith.constant 0 : index
    %c0_87 = arith.constant 0 : index
    %228 = vector.load %arg4[%c0_85, %c0_86, %c0_87] : memref<1x16x16xf32, #tpu.memory_space<vmem>>, vector<1x16x16xf32>
    tpu.vector_store %arg4[%c0_85, %c0_86, %c0_87], %227 {strides = array<i32>} : memref<1x16x16xf32, #tpu.memory_space<vmem>>, vector<1x16x16xf32>,
    return
  }
  func.func @transform_0(%arg0: i32) -> (i32, i32, i32, i32) {
    %c0_i32 = arith.constant 0 : i32
    %c0_i32_0 = arith.constant 0 : i32
    %c0_i32_1 = arith.constant 0 : i32
    %c0_i32_2 = arith.constant 0 : i32
    return %arg0, %c0_i32, %c0_i32_0, %c0_i32_1 : i32, i32, i32, i32
  }
  func.func @transform_1(%arg0: i32) -> i32 {
    %c0_i32 = arith.constant 0 : i32
    %c0_i32_0 = arith.constant 0 : i32
    return %c0_i32 : i32
  }
  func.func @transform_2(%arg0: i32) -> i32 {
    %c0_i32 = arith.constant 0 : i32
    %c0_i32_0 = arith.constant 0 : i32
    return %c0_i32 : i32
  }
  func.func @transform_3(%arg0: i32) -> (i32, i32, i32) {
    %c0_i32 = arith.constant 0 : i32
    %c0_i32_0 = arith.constant 0 : i32
    %c0_i32_1 = arith.constant 0 : i32
    return %arg0, %c0_i32, %c0_i32_0 : i32, i32, i32
  }
}

</mosaic_0001>

<bundles_post_ra>
// kernel: tpu_custom_call.1
= control target key start
LH: loop header
LB: loop body
LE: loop exit
PB: predicated region body
PF: predicated region fallthrough
CT: control target
= control target key end

     0   :  { %s1435_s0 = inlined_call_operand.hbm [shape: f32[2,4,16,16], index: 0, kind: input, shape index: {}]   ;;  %s1436_s1 = inlined_call_operand.vmem [shape: f32[36], index: 1, kind: input, shape index: {}]   ;;  %s1437_s2 = inlined_call_operand.<no memory space> [shape: f32[1], index: 2, kind: input, shape index: {}]   ;;  %s1438_s3 = inlined_call_operand.hbm [shape: f32[2,16,16], index: 3, kind: output, shape index: {}]  }
   0x1   :  { %8 = sst [smem:[#allocation3]] %s1437_s2 }
   0x2   :  { %9 = vsyncpa [#allocation5], 0 }
   0x3   :  { %11 = vsyncpa [#allocation5 + $0x1], 0 }
   0x4   :  { %12 = vsyncpa [#allocation7], 0 }
   0x5   :  { %13 = vsyncpa [#allocation6], 0 }
   0x6   :  { %15 = vsyncpa [#allocation6 + $0x1], 0  ;;  %s1086_s14 = smov 0   ;;  %s1088_s15 = smov 0  }
   0x7   :  { %s1090_s16 = smov 0   ;;  %s1092_s17 = smov 0  }
   0x8 LB: > { %s1107_s2 = sadd.s32 4294967295, %s1052_s17   ;;  %s813_s18 = sadd.s32 4294967294, %s1052_s17   ;;  %s1052_s17 = sphi %s1092_s17, %s1449_s17   ;;  %s1048_s16 = sphi %s1090_s16, %s1448_s16   ;;  %s1044_s15 = sphi %s1088_s15, %s1447_s15   ;;  %s1040_s14 = sphi %s1086_s14, %s1446_s14  }
   0x9   : > { %s1111_s19 = sadd.s32 1, %s1052_s17   ;;  %s28_s20 = sadd.s32 1, %s1048_s16 }
   0xa   : > { %s25_s21 = ssub.s32 %s1052_s17, %s1111_s19  ;;  %p35_p0 = scmp.ne.s32.totalorder %s1048_s16, %s1044_s15 }
   0xb   : > { %p26_p1 = scmp.eq.s32.totalorder %s25_s21, 0  ;;  %p36_p2 = scmp.eq.s32.totalorder %s1052_s17, 0 }
   0xc   : > { %p41_p3 = scmp.ne.s32.totalorder %s1044_s15, %s1040_s14  ;;  %p42_p4 = scmp.eq.s32.totalorder %s1107_s2, 0 }
   0xd   : > { %s1123_s22 = scalar_select %p26_p1, %s1048_s16, %s28_s20  }
   0xe   : > { %p1125_p5 = por %p36_p2, %p35_p0  ;;  %p1131_p6 = por %p42_p4, %p41_p3 }
   0xf   : > { %p107_p7 = scmp.eq.s32.totalorder %s1107_s2, 1  ;;  %p113_p8 = scmp.eq.s32.totalorder %s813_s18, 1 }
  0x10   : > { %p814_p9 = scmp.ge.s32.totalorder %s1052_s17, 1  ;;  %p120_p10 = scmp.lt.s32.totalorder %s1052_s17, 3 }
  0x11   : > { %p1138_p11 = por %p107_p7, %p35_p0  ;;  %p1142_p12 = por %p113_p8, %p41_p3 }
  0x12   : > { %p1146_p13 = pnand %p814_p9, %p120_p10  ;;  %s132_s30 = sshll.u32 %s1436_s1, 4  ;;  %s133_s30 = int_to_ptr.vmem [resolvable:$true] %s132_s30 }
  0x13   : > { %p893_p2 = scmp.lt.s32.totalorder %s1052_s17, 2  ;;  %s146_s4 = sand.u32 1, %s1048_s16  }
  0x14   : > { %p880_p1 = pneg %p1146_p13  ;;  %s817_s6 = sshll.u32 %s146_s4, 6 }
  0x15   : > { %p1162_p3 = pnand %p893_p2, %p1125_p5  ;;  %s1054_s7 = smov [#allocation8]  }
  0x16   : > { %p881_p7 = pnand %p880_p1, %p42_p4  ;;  %s870_s8 = sshll.u32 %s1052_s17, 6 }
  0x17   : > { %s150_s9 = scalar_lea.vmem [#allocation4], %s817_s6  ;;  %s155_s13 = scalar_lea.hbm %s1435_s0, %s870_s8 }
  0x18   : > { %883 = dma.vmem_to_smem (!%p881_p7), %s133_s30, 16, %s1054_s7, [#allocation7]  }
  0x19   : > { %s158_s10 = sshll.u32 %s150_s9, 4  ;;  %s156_s18 = sshll.u32 %s155_s13, 4  ;;  %s159_s10 = int_to_ptr.vmem [resolvable:$true] %s158_s10  ;;  %s157_s18 = int_to_ptr.hbm [resolvable:$true] %s156_s18 }
  0x1a   : > { %s147_s20 = scalar_lea.sflag [#allocation5], %s146_s4  ;;  %s952_s21 = sshra.s32 %s157_s18, 4  ;;  %s953_s21 = int_to_ptr.hbm [resolvable:$true] %s952_s21 }
  0x1b   : > { %s954_s23 = scalar_lea.hbm %s953_s21, 64  ;;  %p956_p8 = pneg %p1162_p3 }
  0x1c   : > { %p955_p5 = scmp.ne.s32.totalorder %s953_s21, %s954_s23  ;;  %s959_s30 = scalar_lea.hbm %s1435_s0, 128 }
  0x1d   : > { %p960_p1 = scmp.lt.s32.totalorder %s953_s21, %s1435_s0  ;;  %p961_p2 = scmp.lt.s32.totalorder %s959_s30, %s954_s23 }
  0x1e   : > { %p957_p9 = pnand %p956_p8, %p955_p5 }
  0x1f   : > { %p962_p7 = por %p961_p2, %p960_p1 }
  0x20   : > { %p958_p10 = pneg %p957_p9 }
  0x22   : > { %p963_p0 = pnand %p962_p7, %p958_p10 }
  0x24   : > { %966 = shalt.err (!%p963_p0)
}
  0x25   : > { %s1055_s4 = smov 128   ;;  %s1056_s8 = smov 8  }
  0x26   : > { %887 = dma.hbm_to_vmem [thread:$0]  (!%p1162_p3), %s157_s18, 1024, %s159_s10, %s147_s20, %s1055_s4, %s1055_s4, %s1056_s8  }
  0x27   : > { %170 = sbr.rel (%p1146_p13) target bundleno = 424 (0x1a8), region = 32  ;;  %s1183_s9 = sand.u32 (!%p1146_p13), 1, %s1044_s15  }
  0x28   : > { %s821_s11 = sshll.u32 (!%p1146_p13), %s1183_s9, 6  ;;  %s173_s12 = scalar_lea.sflag (!%p1146_p13), [#allocation5], %s1183_s9 }
  0x29   : > { %s176_s13 = scalar_lea.vmem (!%p1146_p13), [#allocation4], %s821_s11 }
  0x2c   : > { %1027 = dma.done.wait (%p1131_p6), %s173_s12, 1024  }
  0x2d   : > { %1029 = vsyncadd (%p1131_p6), %s173_s12, 4294966272 }
  0x2e   : > { %1031 = dma.done.wait (%p42_p4), [#allocation7], 16  }
  0x2f   : > { %1033 = vsyncadd (%p42_p4), [#allocation7], 4294967280 }
  0x30   : > { %187 = sfence }
  0x31   : > { %v220_v0 = vld [vmem:[%s176_s13] sm:$0xff]  ;;  %v824_v1 = vld [vmem:[%s176_s13 + $0x10] sm:$0xff]  ;;  %s1057_s27 = smov 1   ;;  %v221_v3 = vld [vmem:[%s176_s13 + $0x8] sm:$0xff]  ;;  %vm206_vm0 = vcmask 146432   ;;  %v1058_v8 = vmov 0.0  }
  0x32   : > { %224 = vrot.lane.b32.xlu0 %v220_v0, %s1057_s27  ;;  %238 = vrot.lane.b32.xlu1 %v824_v1, %s1057_s27  ;;  %v826_v2 = vld [vmem:[%s176_s13 + $0x20] sm:$0xff]  ;;  %v825_v4 = vld [vmem:[%s176_s13 + $0x18] sm:$0xff]  ;;  %207 = vst.msk [vmem:[#allocation2] sm:$0xff] %vm206_vm0, %v1058_v8  ;;  %vm209_vm1 = vcmask 140288   ;;  %s831_s24 = sld [smem:[#allocation8 + $0x2]]  ;;  %vm230_vm2 = vcmask 138248  }
  0x33   : > { %252 = vrot.lane.b32.xlu2 %v826_v2, %s1057_s27  ;;  %v827_v5 = vld [vmem:[%s176_s13 + $0x28] sm:$0xff]  ;;  %v828_v6 = vld [vmem:[%s176_s13 + $0x30] sm:$0xff]  ;;  %v829_v7 = vld [vmem:[%s176_s13 + $0x38] sm:$0xff]  ;;  %208 = vst.msk [vmem:[#allocation2 + $0x8] sm:$0xff] %vm206_vm0, %v1058_v8  ;;  %s830_s5 = sld [smem:[#allocation8 + $0x1]]  ;;  %s1059_s18 = smov 126  }
  0x34   : > { %211 = vst.msk [vmem:[#allocation2 + $0x18] sm:$0xff] %vm206_vm0, %v1058_v8  ;;  %s833_s10 = sld [smem:[#allocation8 + $0x4]]  ;;  %s1060_s20 = smov 127   ;;  %vm709_vm3 = vcmask 130048  }
  0x35   : > { %212 = vst.msk [vmem:[#allocation2 + $0x20] sm:$0xff] %vm206_vm0, %v1058_v8  ;;  %s1205_s21 = sld [smem:[#allocation8 + $0x7]] }
  0x36   : > { %214 = vst.msk [vmem:[#allocation2 + $0x30] sm:$0xff] %vm206_vm0, %v1058_v8  ;;  %s834_s23 = sld [smem:[#allocation8 + $0x5]] }
  0x37   : > { %215 = vst.msk [vmem:[#allocation2 + $0x38] sm:$0xff] %vm206_vm0, %v1058_v8  ;;  %s837_s28 = sld [smem:[#allocation8 + $0x8]] }
  0x38   : > { %217 = vst.msk [vmem:[#allocation2 + $0x48] sm:$0xff] %vm206_vm0, %v1058_v8  ;;  %v300_v11 = vstv %s831_s24  ;;  %s840_s29 = sld [smem:[#allocation8 + $0xb]] }
  0x39   : > { %218 = vst.msk [vmem:[#allocation2 + $0x50] sm:$0xff] %vm206_vm0, %v1058_v8  ;;  %v286_v12 = vstv %s830_s5  ;;  %s839_s30 = sld [smem:[#allocation8 + $0xa]] }
  0x3a   : > { %226 = vrot.lane.b32.xlu0 %v221_v3, %s1057_s27  ;;  %240 = vrot.lane.b32.xlu1 %v825_v4, %s1057_s27  ;;  %210 = vst.msk [vmem:[#allocation2 + $0x10] sm:$0x3] %vm209_vm1, %v1058_v8  ;;  %v322_v20 = vstv %s833_s10  ;;  %s842_s6 = sld [smem:[#allocation8 + $0xd]] }
  0x3b   : > { %254 = vrot.lane.b32.xlu2 %v827_v5, %s1057_s27  ;;  %213 = vst.msk [vmem:[#allocation2 + $0x28] sm:$0x3] %vm209_vm1, %v1058_v8  ;;  %v358_v27 = vstv %s1205_s21  ;;  %s845_s7 = sld [smem:[#allocation8 + $0x10]] }
  0x3c   : > { %216 = vst.msk [vmem:[#allocation2 + $0x40] sm:$0x3] %vm209_vm1, %v1058_v8  ;;  %v336_v28 = vstv %s834_s23  ;;  %s843_s4 = sld [smem:[#allocation8 + $0xe]] }
  0x3d   : > { %219 = vst.msk [vmem:[#allocation2 + $0x58] sm:$0x3] %vm209_vm1, %v1058_v8  ;;  %v372_v34 = vstv %s837_s28  ;;  %s846_s8 = sld [smem:[#allocation8 + $0x11]] }
  0x3e   : > { %v408_v39 = vstv %s840_s29  ;;  %s1266_s11 = sld [smem:[#allocation8 + $0x14]] }
  0x3f   : > { %v394_v40 = vstv %s839_s30  ;;  %s848_s12 = sld [smem:[#allocation8 + $0x13]] }
  0x40   : > { %v430_v46 = vstv %s842_s6  ;;  %s851_s13 = sld [smem:[#allocation8 + $0x16]] }
  0x41   : > { %v466_v52 = vstv %s845_s7  ;;  %s852_s24 = sld [smem:[#allocation8 + $0x17]] }
  0x42   : > { %266 = vrot.lane.b32.xlu0 %v828_v6, %s1057_s27  ;;  %268 = vrot.lane.b32.xlu1 %v829_v7, %s1057_s27  ;;  %v444_v53 = vstv %s843_s4  ;;  %s854_s27 = sld [smem:[#allocation8 + $0x19]] }
  0x43   : > { %v480_v59 = vstv %s846_s8  ;;  %s855_s5 = sld [smem:[#allocation8 + $0x1a]] }
  0x44   : > { %v516_v0 = vstv %s1266_s11  ;;  %s1307_s10 = sld [smem:[#allocation8 + $0x1d]] }
  0x45   : > { %v502_v1 = vstv %s848_s12  ;;  %s857_s21 = sld [smem:[#allocation8 + $0x1c]] }
  0x46   : > { %v538_v8 = vstv %s851_s13  ;;  %s1320_s23 = sld [smem:[#allocation8 + $0x1f]] }
  0x47   : > { %s1325_s28 = sld [smem:[#allocation8]] }
  0x48   : > { %s1335_s29 = sld [smem:[#allocation3]] }
  0x49   : > { %s1337_s30 = sld [smem:[#allocation8 + $0x22]] }
  0x4a   : > { %s1341_s6 = sld [smem:[#allocation8 + $0x20]] }
  0x4b   : > { %s1347_s7 = sld [smem:[#allocation8 + $0x3]] }
  0x4c   : > { %s1356_s4 = sld [smem:[#allocation8 + $0x23]] }
  0x4d   : > { %s835_s8 = sld [smem:[#allocation8 + $0x6]] }
  0x4e   : > { %s841_s11 = sld [smem:[#allocation8 + $0xc]] }
  0x4f   : > { %s847_s12 = sld [smem:[#allocation8 + $0x12]] }
  0x50   : > { %s850_s13 = sld [smem:[#allocation8 + $0x15]] }
  0x8d   : > { %v253_v24 = vpop.permute.xlu2 %252 }
  0x8e   : > { %259 = vst.msk [vmem:[#allocation2 + $0x31] sm:$0xff] %vm230_vm2, %v253_v24 }
  0x95   : > { %v255_v32 = vpop.permute.xlu2 %254  ;;  %v1277_v63 = vld [vmem:[#allocation2 + $0x30] sm:$0xff] }
  0x96   : > { %260 = vst.msk [vmem:[#allocation2 + $0x39] sm:$0xff] %vm230_vm2, %v255_v32  ;;  %v517_v3 = vmul.f32 %v516_v0, %v1277_v63  ;;  %v503_v4 = vmul.f32 %v502_v1, %v1277_v63  ;;  %v610_v32 = vstv %s857_s21  ;;  %s823_s21 = sshll.u32 %s1183_s9, 4 }
  0x9d   : > { %v1287_v6 = vld [vmem:[#allocation2 + $0x39] sm:$0xff] }
  0x9e   : > { %v1289_v7 = vld [vmem:[#allocation2 + $0x38] sm:$0xff] }
  0xa4   : > { %v225_v9 = vpop.permute.xlu0 %224  ;;  %v239_v10 = vpop.permute.xlu1 %238 }
  0xa5   : > { %231 = vst.msk [vmem:[#allocation2 + $0x1] sm:$0xff] %vm230_vm2, %v225_v9  ;;  %v540_v9 = vmul.f32 %v538_v8, %v1287_v6 }
  0xa6   : > { %245 = vst.msk [vmem:[#allocation2 + $0x19] sm:$0xff] %vm230_vm2, %v239_v10  ;;  %v504_v10 = vmul.f32 %v502_v1, %v1289_v7 }
  0xac   : > { %v227_v13 = vpop.permute.xlu0 %226  ;;  %v1197_v14 = vld [vmem:[#allocation2] sm:$0xff]  ;;  %v241_v15 = vpop.permute.xlu1 %240 }
  0xad   : > { %232 = vst.msk [vmem:[#allocation2 + $0x9] sm:$0xff] %vm230_vm2, %v227_v13  ;;  %v301_v16 = vmul.f32 %v300_v11, %v1197_v14  ;;  %v287_v17 = vmul.f32 %v286_v12, %v1197_v14  ;;  %v1218_v25 = vld [vmem:[#allocation2 + $0x1] sm:$0xff]  ;;  %v1238_v38 = vld [vmem:[#allocation2 + $0x18] sm:$0xff] }
  0xae   : > { %246 = vst.msk [vmem:[#allocation2 + $0x21] sm:$0xff] %vm230_vm2, %v241_v15  ;;  %v323_v29 = vmul.f32 %v322_v20, %v1218_v25  ;;  %v337_v31 = vmul.f32 %v336_v28, %v1218_v25  ;;  %v409_v41 = vmul.f32 %v408_v39, %v1238_v38  ;;  %v395_v42 = vmul.f32 %v394_v40, %v1238_v38  ;;  %v1256_v50 = vld [vmem:[#allocation2 + $0x19] sm:$0xff] }
  0xaf   : > { %305 = vrot.lane.b32.xlu1 %v301_v16, %s1059_s18  ;;  %291 = vrot.lane.b32.xlu2 %v287_v17, %s1060_s20  ;;  %v431_v54 = vmul.f32 %v430_v46, %v1256_v50  ;;  %v445_v56 = vmul.f32 %v444_v53, %v1256_v50  ;;  %v1299_v13 = vld [vmem:[#allocation2 + $0x32] sm:$0xff]  ;;  %v574_v15 = vstv %s854_s27  ;;  %v552_v16 = vstv %s852_s24  ;;  %s853_s27 = sld [smem:[#allocation8 + $0x18]] }
  0xb0   : > { %v554_v24 = vmul.f32 %v552_v16, %v1287_v6  ;;  %s856_s24 = sld [smem:[#allocation8 + $0x1b]] }
  0xb4   : > { %v1207_v18 = vld [vmem:[#allocation2 + $0x8] sm:$0xff]  ;;  %v267_v57 = vpop.permute.xlu0 %266  ;;  %v269_v2 = vpop.permute.xlu1 %268 }
  0xb5   : > { %v1209_v19 = vld [vmem:[#allocation2 + $0x9] sm:$0xff]  ;;  %v288_v21 = vmul.f32 %v286_v12, %v1207_v18  ;;  %v302_v23 = vmul.f32 %v300_v11, %v1207_v18  ;;  %v1246_v44 = vld [vmem:[#allocation2 + $0x21] sm:$0xff]  ;;  %273 = vst.msk [vmem:[#allocation2 + $0x49] sm:$0xff] %vm230_vm2, %v267_v57  ;;  %v518_v11 = vmul.f32 %v516_v0, %v1289_v7  ;;  %v1297_v12 = vld [vmem:[#allocation2 + $0x31] sm:$0xff] }
  0xb6   : > { %v324_v22 = vmul.f32 %v322_v20, %v1209_v19  ;;  %v1220_v26 = vld [vmem:[#allocation2 + $0x2] sm:$0xff]  ;;  %v1230_v33 = vld [vmem:[#allocation2 + $0xa] sm:$0xff]  ;;  %v338_v35 = vmul.f32 %v336_v28, %v1209_v19  ;;  %v432_v47 = vmul.f32 %v430_v46, %v1246_v44  ;;  %v1258_v51 = vld [vmem:[#allocation2 + $0x1a] sm:$0xff]  ;;  %v446_v60 = vmul.f32 %v444_v53, %v1246_v44  ;;  %274 = vst.msk [vmem:[#allocation2 + $0x51] sm:$0xff] %vm230_vm2, %v269_v2 }
  0xb7   : > { %293 = vrot.lane.b32.xlu0 %v288_v21, %s1060_s20  ;;  %307 = vrot.lane.b32.xlu2 %v302_v23, %s1059_s18  ;;  %v359_v30 = vmul.f32 %v358_v27, %v1220_v26  ;;  %v374_v36 = vmul.f32 %v372_v34, %v1230_v33  ;;  %v360_v37 = vmul.f32 %v358_v27, %v1230_v33  ;;  %v1248_v45 = vld [vmem:[#allocation2 + $0x20] sm:$0xff]  ;;  %v588_v23 = vstv %s855_s5  ;;  %s859_s5 = sld [smem:[#allocation8 + $0x1e]] }
  0xb8   : > { %329 = vrot.lane.b32.xlu1 %v324_v22, %s1060_s20  ;;  %v373_v43 = vmul.f32 %v372_v34, %v1220_v26  ;;  %v396_v48 = vmul.f32 %v394_v40, %v1248_v45  ;;  %v410_v49 = vmul.f32 %v408_v39, %v1248_v45  ;;  %v467_v55 = vmul.f32 %v466_v52, %v1258_v51  ;;  %v1269_v58 = vld [vmem:[#allocation2 + $0x22] sm:$0xff]  ;;  %v1309_v22 = vld [vmem:[#allocation2 + $0x3a] sm:$0xff] }
  0xb9   : > { %v482_v61 = vmul.f32 %v480_v59, %v1269_v58  ;;  %v468_v62 = vmul.f32 %v466_v52, %v1269_v58  ;;  %v481_v5 = vmul.f32 %v480_v59, %v1258_v51  ;;  %v539_v17 = vmul.f32 %v538_v8, %v1297_v12 }
  0xba   : > { %v575_v20 = vmul.f32 %v574_v15, %v1299_v13  ;;  %v553_v21 = vmul.f32 %v552_v16, %v1297_v12  ;;  %v590_v27 = vmul.f32 %v588_v23, %v1309_v22  ;;  %v576_v28 = vmul.f32 %v574_v15, %v1309_v22 }
  0xbb   : > { %v646_v40 = vstv %s1320_s23  ;;  %s871_s23 = sshll.u32 %s1107_s2, 4  ;;  %s713_s2 = scalar_lea.sflag [#allocation6], %s1183_s9 }
  0xbc   : > { %v1351_v52 = vld [vmem:[#allocation2 + $0x49] sm:$0xff] }
  0xbd   : > { %v1332_v39 = vld [vmem:[#allocation2 + $0x51] sm:$0xff]  ;;  %v647_v57 = vmul.f32 %v646_v40, %v1351_v52 }
  0xbe   : > { %v1353_v53 = vld [vmem:[#allocation2 + $0x4a] sm:$0xff]  ;;  %v1367_v2 = vld [vmem:[#allocation2 + $0x52] sm:$0xff] }
  0xbf   : > { %327 = vrot.lane.b32.xlu0 %v323_v29, %s1060_s20  ;;  %341 = vrot.lane.b32.xlu2 %v337_v31, %s1059_s18  ;;  %v1317_v29 = vld [vmem:[#allocation2 + $0x48] sm:$0xff] }
  0xc0   : > { %363 = vrot.lane.b32.xlu1 %v359_v30, %s1060_s20  ;;  %v624_v30 = vstv %s1307_s10  ;;  %s862_s10 = sld [smem:[#allocation8 + $0x21]] }
  0xc1   : > { %v625_v34 = vmul.f32 %v624_v30, %v1317_v29 }
  0xc7   : > { %343 = vrot.lane.b32.xlu0 %v338_v35, %s1059_s18  ;;  %365 = vrot.lane.b32.xlu2 %v360_v37, %s1060_s20  ;;  %v611_v35 = vmul.f32 %v610_v32, %v1317_v29  ;;  %v1330_v37 = vld [vmem:[#allocation2 + $0x50] sm:$0xff] }
  0xc8   : > { %379 = vrot.lane.b32.xlu1 %v374_v36, %s1059_s18  ;;  %v589_v36 = vmul.f32 %v588_v23, %v1299_v13  ;;  %v626_v46 = vmul.f32 %v624_v30, %v1330_v37  ;;  %v352_v30 = vstv %s835_s8 }
  0xcf   : > { %377 = vrot.lane.b32.xlu0 %v373_v43, %s1059_s18  ;;  %399 = vrot.lane.b32.xlu2 %v395_v42, %s1060_s20  ;;  %v612_v42 = vmul.f32 %v610_v32, %v1330_v37  ;;  %v648_v43 = vmul.f32 %v646_v40, %v1332_v39 }
  0xd0   : > { %413 = vrot.lane.b32.xlu1 %v409_v41, %s1059_s18 }
  0xd7   : > { %401 = vrot.lane.b32.xlu0 %v396_v48, %s1060_s20  ;;  %415 = vrot.lane.b32.xlu2 %v410_v49, %s1059_s18 }
  0xd8   : > { %437 = vrot.lane.b32.xlu1 %v432_v47, %s1060_s20  ;;  %v280_v47 = vstv %s1325_s28 }
  0xd9   : > { %v281_v48 = vmul.f32 %v280_v47, %v1197_v14  ;;  %v316_v14 = vstv %s1347_s7  ;;  %v282_v8 = vmul.f32 %v280_v47, %v1207_v18 }
  0xda   : > { %v318_v18 = vmul.f32 %v316_v14, %v1209_v19  ;;  %v354_v19 = vmul.f32 %v352_v30, %v1230_v33 }
  0xdf   : > { %435 = vrot.lane.b32.xlu0 %v431_v54, %s1060_s20  ;;  %449 = vrot.lane.b32.xlu2 %v445_v56, %s1059_s18  ;;  %v682_v54 = vstv %s1337_s30  ;;  %v660_v56 = vstv %s1341_s6  ;;  %s724_s30 = scalar_lea.hbm %s1438_s3, %s871_s23  ;;  %s205_s6 = scalar_lea.vmem [#allocation9], %s823_s21 }
  0xe0   : > { %471 = vrot.lane.b32.xlu1 %v467_v55, %s1060_s20  ;;  %v276_v55 = vstv %s1335_s29  ;;  %v683_v59 = vmul.f32 %v682_v54, %v1353_v53  ;;  %v684_v15 = vmul.f32 %v682_v54, %v1367_v2  ;;  %s725_s7 = sshll.u32 %s205_s6, 4  ;;  %s726_s7 = int_to_ptr.vmem [resolvable:$true] %s725_s7 }
  0xe1   : > { %v284_v16 = vadd.f32 %v282_v8, %v276_v55 }
  0xe7   : > { %451 = vrot.lane.b32.xlu0 %v446_v60, %s1059_s18  ;;  %473 = vrot.lane.b32.xlu2 %v468_v62, %s1060_s20  ;;  %v283_v60 = vadd.f32 %v281_v48, %v276_v55 }
  0xe8   : > { %487 = vrot.lane.b32.xlu1 %v482_v61, %s1059_s18  ;;  %v661_v61 = vmul.f32 %v660_v56, %v1351_v52 }
  0xef   : > { %485 = vrot.lane.b32.xlu0 %v481_v5, %s1059_s18  ;;  %507 = vrot.lane.b32.xlu2 %v503_v4, %s1060_s20  ;;  %v317_v4 = vmul.f32 %v316_v14, %v1218_v25 }
  0xf0   : > { %521 = vrot.lane.b32.xlu1 %v517_v3, %s1059_s18  ;;  %v696_v3 = vstv %s1356_s4  ;;  %s727_s4 = sshll.u32 %s724_s30, 4  ;;  %s728_s4 = int_to_ptr.hbm [resolvable:$true] %s727_s4 }
  0xf1   : > { %v697_v23 = vmul.f32 %v696_v3, %v1353_v53  ;;  %s996_s8 = sshra.s32 %s728_s4, 4  ;;  %s997_s8 = int_to_ptr.hbm [resolvable:$true] %s996_s8 }
  0xf2   : > { %p1003_p0 = scmp.lt.s32.totalorder %s997_s8, %s1438_s3 }
  0xf7   : > { %509 = vrot.lane.b32.xlu0 %v504_v10, %s1060_s20  ;;  %523 = vrot.lane.b32.xlu2 %v518_v11, %s1059_s18  ;;  %v662_v10 = vmul.f32 %v660_v56, %v1332_v39  ;;  %v698_v11 = vmul.f32 %v696_v3, %v1367_v2 }
  0xf8   : > { %545 = vrot.lane.b32.xlu1 %v540_v9, %s1060_s20 }
  0xff   : > { %543 = vrot.lane.b32.xlu0 %v539_v17, %s1060_s20  ;;  %557 = vrot.lane.b32.xlu2 %v553_v21, %s1059_s18 }
 0x100   : > { %579 = vrot.lane.b32.xlu1 %v575_v20, %s1060_s20 }
 0x107   : > { %559 = vrot.lane.b32.xlu0 %v554_v24, %s1059_s18  ;;  %581 = vrot.lane.b32.xlu2 %v576_v28, %s1060_s20 }
 0x108   : > { %595 = vrot.lane.b32.xlu1 %v590_v27, %s1059_s18 }
 0x109   : > { %v292_v31 = vpop.permute.xlu2 %291 }
 0x10a   : > { %v297_v62 = vadd.f32 %v292_v31, %v283_v60 }
 0x10f   : > { %593 = vrot.lane.b32.xlu0 %v589_v36, %s1059_s18  ;;  %615 = vrot.lane.b32.xlu2 %v611_v35, %s1060_s20  ;;  %v353_v35 = vmul.f32 %v352_v30, %v1220_v26 }
 0x110   : > { %629 = vrot.lane.b32.xlu1 %v625_v34, %s1059_s18 }
 0x111   : > { %v308_v41 = vpop.permute.xlu2 %307 }
 0x117   : > { %617 = vrot.lane.b32.xlu0 %v612_v42, %s1060_s20  ;;  %631 = vrot.lane.b32.xlu2 %v626_v46, %s1059_s18 }
 0x118   : > { %653 = vrot.lane.b32.xlu1 %v648_v43, %s1060_s20 }
 0x119   : > { %v342_v49 = vpop.permute.xlu2 %341 }
 0x11f   : > { %651 = vrot.lane.b32.xlu0 %v647_v57, %s1060_s20  ;;  %665 = vrot.lane.b32.xlu2 %v661_v61, %s1059_s18 }
 0x120   : > { %687 = vrot.lane.b32.xlu1 %v683_v59, %s1060_s20 }
 0x121   : > { %v306_v0 = vpop.permute.xlu1 %305  ;;  %v366_v5 = vpop.permute.xlu2 %365 }
 0x122   : > { %v311_v1 = vadd.f32 %v306_v0, %v297_v62  ;;  %v424_v0 = vstv %s841_s11 }
 0x123   : > { %v425_v3 = vmul.f32 %v424_v0, %v1256_v50 }
 0x124   : > { %v319_v9 = vadd.f32 %v317_v4, %v311_v1 }
 0x127   : > { %667 = vrot.lane.b32.xlu0 %v662_v10, %s1059_s18  ;;  %689 = vrot.lane.b32.xlu2 %v684_v15, %s1060_s20  ;;  %s838_s20 = sld [smem:[#allocation8 + $0x9]] }
 0x128   : > { %703 = vrot.lane.b32.xlu1 %v698_v11, %s1059_s18  ;;  %v426_v11 = vmul.f32 %v424_v0, %v1246_v44 }
 0x129   : > { %v294_v17 = vpop.permute.xlu0 %293  ;;  %v400_v27 = vpop.permute.xlu2 %399 }
 0x12a   : > { %v330_v20 = vpop.permute.xlu1 %329  ;;  %v298_v25 = vadd.f32 %v294_v17, %v284_v16 }
 0x12c   : > { %v312_v21 = vadd.f32 %v308_v41, %v298_v25 }
 0x12d   : > { %v388_v48 = vstv %s838_s20  ;;  %s998_s20 = scalar_lea.hbm %s997_s8, 16 }
 0x12e   : > { %v320_v24 = vadd.f32 %v318_v18, %v312_v21  ;;  %v390_v57 = vmul.f32 %v388_v48, %v1248_v45  ;;  %v389_v60 = vmul.f32 %v388_v48, %v1238_v38  ;;  %p999_p4 = scmp.ne.s32.totalorder %s997_s8, %s998_s20 }
 0x12f   : > { %701 = vrot.lane.b32.xlu0 %v697_v23, %s1059_s18  ;;  %s844_s18 = sld [smem:[#allocation8 + $0xf]] }
 0x130   : > { %v334_v40 = vadd.f32 %v330_v20, %v320_v24  ;;  %p1000_p6 = pnand %p999_p4, %p1138_p11 }
 0x131   : > { %v328_v28 = vpop.permute.xlu0 %327  ;;  %v416_v42 = vpop.permute.xlu2 %415 }
 0x132   : > { %v364_v31 = vpop.permute.xlu1 %363  ;;  %v333_v32 = vadd.f32 %v328_v28, %v319_v9  ;;  %p1001_p13 = pneg %p1000_p6 }
 0x134   : > { %v347_v34 = vadd.f32 %v342_v49, %v333_v32  ;;  %v496_v32 = vstv %s847_s12  ;;  %s1002_s12 = scalar_lea.hbm %s1438_s3, 32 }
 0x135   : > { %v460_v38 = vstv %s844_s18  ;;  %p1004_p3 = scmp.lt.s32.totalorder %s1002_s12, %s998_s20 }
 0x136   : > { %v355_v36 = vadd.f32 %v353_v35, %v347_v34  ;;  %v461_v21 = vmul.f32 %v460_v38, %v1258_v51  ;;  %v462_v28 = vmul.f32 %v460_v38, %v1269_v58 }
 0x137   : > { %p1005_p5 = por %p1004_p3, %p1003_p0 }
 0x138   : > { %v369_v55 = vadd.f32 %v364_v31, %v355_v36 }
 0x139   : > { %v344_v41 = vpop.permute.xlu0 %343  ;;  %v450_v26 = vpop.permute.xlu2 %449  ;;  %p1006_p8 = pnand %p1005_p5, %p1001_p13 }
 0x13a   : > { %v380_v43 = vpop.permute.xlu1 %379  ;;  %v348_v46 = vadd.f32 %v344_v41, %v334_v40  ;;  %v498_v40 = vmul.f32 %v496_v32, %v1289_v7  ;;  %v497_v41 = vmul.f32 %v496_v32, %v1277_v63  ;;  %v568_v63 = vstv %s853_s27 }
 0x13c   : > { %v356_v47 = vadd.f32 %v354_v19, %v348_v46 }
 0x13e   : > { %v370_v54 = vadd.f32 %v366_v5, %v356_v47  ;;  %v532_v47 = vstv %s850_s13 }
 0x13f   : > { %v534_v7 = vmul.f32 %v532_v47, %v1287_v6 }
 0x140   : > { %v384_v56 = vadd.f32 %v380_v43, %v370_v54  ;;  %v533_v54 = vmul.f32 %v532_v47, %v1297_v12 }
 0x141   : > { %v378_v49 = vpop.permute.xlu0 %377  ;;  %v474_v10 = vpop.permute.xlu2 %473 }
 0x142   : > { %v414_v59 = vpop.permute.xlu1 %413  ;;  %v383_v61 = vadd.f32 %v378_v49, %v369_v55  ;;  %v392_v14 = vadd.f32 %v390_v57, %v384_v56 }
 0x144   : > { %v391_v62 = vadd.f32 %v389_v60, %v383_v61 }
 0x146   : > { %v405_v1 = vadd.f32 %v400_v27, %v391_v62 }
 0x148   : > { %v419_v33 = vadd.f32 %v414_v59, %v405_v1  ;;  %v569_v1 = vmul.f32 %v568_v63, %v1299_v13 }
 0x149   : > { %v402_v4 = vpop.permute.xlu0 %401  ;;  %v508_v18 = vpop.permute.xlu2 %507 }
 0x14a   : > { %v438_v8 = vpop.permute.xlu1 %437  ;;  %v406_v5 = vadd.f32 %v402_v4, %v392_v14  ;;  %v427_v9 = vadd.f32 %v425_v3, %v419_v33 }
 0x14c   : > { %v420_v45 = vadd.f32 %v416_v42, %v406_v5  ;;  %v570_v5 = vmul.f32 %v568_v63, %v1309_v22 }
 0x14e   : > { %v428_v15 = vadd.f32 %v426_v11, %v420_v45  ;;  %v604_v45 = vstv %s856_s24 }
 0x14f   : > { %v606_v38 = vmul.f32 %v604_v45, %v1330_v37 }
 0x150   : > { %v442_v23 = vadd.f32 %v438_v8, %v428_v15 }
 0x151   : > { %v436_v16 = vpop.permute.xlu0 %435  ;;  %v524_v35 = vpop.permute.xlu2 %523 }
 0x152   : > { %v472_v17 = vpop.permute.xlu1 %471  ;;  %v441_v20 = vadd.f32 %v436_v16, %v427_v9 }
 0x154   : > { %v455_v25 = vadd.f32 %v450_v26, %v441_v20  ;;  %v605_v20 = vmul.f32 %v604_v45, %v1317_v29 }
 0x156   : > { %v463_v50 = vadd.f32 %v461_v21, %v455_v25 }
 0x158   : > { %v477_v34 = vadd.f32 %v472_v17, %v463_v50  ;;  %v640_v50 = vstv %s859_s5 }
 0x159   : > { %v452_v24 = vpop.permute.xlu0 %451  ;;  %v558_v59 = vpop.permute.xlu2 %557 }
 0x15a   : > { %v488_v27 = vpop.permute.xlu1 %487  ;;  %v456_v30 = vadd.f32 %v452_v24, %v442_v23  ;;  %v641_v24 = vmul.f32 %v640_v50, %v1351_v52 }
 0x15c   : > { %v464_v31 = vadd.f32 %v462_v28, %v456_v30 }
 0x15e   : > { %v478_v44 = vadd.f32 %v474_v10, %v464_v31 }
 0x160   : > { %v492_v36 = vadd.f32 %v488_v27, %v478_v44  ;;  %v642_v44 = vmul.f32 %v640_v50, %v1332_v39 }
 0x161   : > { %v486_v42 = vpop.permute.xlu0 %485  ;;  %v582_v33 = vpop.permute.xlu2 %581 }
 0x162   : > { %v522_v51 = vpop.permute.xlu1 %521  ;;  %v491_v43 = vadd.f32 %v486_v42, %v477_v34  ;;  %v500_v19 = vadd.f32 %v498_v40, %v492_v36 }
 0x164   : > { %v499_v46 = vadd.f32 %v497_v41, %v491_v43 }
 0x166   : > { %v513_v48 = vadd.f32 %v508_v18, %v499_v46 }
 0x168   : > { %v527_v58 = vadd.f32 %v522_v51, %v513_v48 }
 0x169   : > { %v510_v55 = vpop.permute.xlu0 %509  ;;  %v616_v11 = vpop.permute.xlu2 %615 }
 0x16a   : > { %v546_v56 = vpop.permute.xlu1 %545  ;;  %v514_v57 = vadd.f32 %v510_v55, %v500_v19  ;;  %v535_v49 = vadd.f32 %v533_v54, %v527_v58 }
 0x16c   : > { %v528_v26 = vadd.f32 %v524_v35, %v514_v57  ;;  %v676_v35 = vstv %s862_s10 }
 0x16d   : > { %v677_v51 = vmul.f32 %v676_v35, %v1353_v53  ;;  %v678_v46 = vmul.f32 %v676_v35, %v1367_v2 }
 0x16e   : > { %v536_v60 = vadd.f32 %v534_v7, %v528_v26 }
 0x170   : > { %v550_v3 = vadd.f32 %v546_v56, %v536_v60 }
 0x171   : > { %v544_v61 = vpop.permute.xlu0 %543  ;;  %v632_v27 = vpop.permute.xlu2 %631 }
 0x172   : > { %v580_v14 = vpop.permute.xlu1 %579  ;;  %v549_v62 = vadd.f32 %v544_v61, %v535_v49 }
 0x174   : > { %v563_v0 = vadd.f32 %v558_v59, %v549_v62 }
 0x176   : > { %v571_v12 = vadd.f32 %v569_v1, %v563_v0 }
 0x178   : > { %v585_v15 = vadd.f32 %v580_v14, %v571_v12 }
 0x179   : > { %v560_v4 = vpop.permute.xlu0 %559  ;;  %v666_v40 = vpop.permute.xlu2 %665 }
 0x17a   : > { %v596_v8 = vpop.permute.xlu1 %595  ;;  %v564_v9 = vadd.f32 %v560_v4, %v550_v3 }
 0x17c   : > { %v572_v10 = vadd.f32 %v570_v5, %v564_v9 }
 0x17e   : > { %v586_v6 = vadd.f32 %v582_v33, %v572_v10 }
 0x180   : > { %v600_v16 = vadd.f32 %v596_v8, %v586_v6 }
 0x181   : > { %v594_v17 = vpop.permute.xlu0 %593  ;;  %v690_v39 = vpop.permute.xlu2 %689 }
 0x182   : > { %v630_v13 = vpop.permute.xlu1 %629  ;;  %v599_v25 = vadd.f32 %v594_v17, %v585_v15  ;;  %v608_v21 = vadd.f32 %v606_v38, %v600_v16 }
 0x184   : > { %v607_v18 = vadd.f32 %v605_v20, %v599_v25 }
 0x186   : > { %v621_v23 = vadd.f32 %v616_v11, %v607_v18 }
 0x188   : > { %v635_v22 = vadd.f32 %v630_v13, %v621_v23 }
 0x189   : > { %v618_v28 = vpop.permute.xlu0 %617 }
 0x18a   : > { %v622_v30 = vadd.f32 %v618_v28, %v608_v21  ;;  %v643_v31 = vadd.f32 %v641_v24, %v635_v22  ;;  %v654_v37 = vpop.permute.xlu1 %653 }
 0x18c   : > { %v636_v32 = vadd.f32 %v632_v27, %v622_v30 }
 0x18e   : > { %v644_v29 = vadd.f32 %v642_v44, %v636_v32 }
 0x190   : > { %v658_v43 = vadd.f32 %v654_v37, %v644_v29 }
 0x191   : > { %v652_v34 = vpop.permute.xlu0 %651 }
 0x192   : > { %v657_v36 = vadd.f32 %v652_v34, %v643_v31  ;;  %v688_v52 = vpop.permute.xlu1 %687 }
 0x194   : > { %v671_v42 = vadd.f32 %v666_v40, %v657_v36 }
 0x196   : > { %v679_v41 = vadd.f32 %v677_v51, %v671_v42 }
 0x198   : > { %v693_v54 = vadd.f32 %v688_v52, %v679_v41 }
 0x199   : > { %v668_v19 = vpop.permute.xlu0 %667 }
 0x19a   : > { %v672_v47 = vadd.f32 %v668_v19, %v658_v43  ;;  %v704_v53 = vpop.permute.xlu1 %703 }
 0x19c   : > { %v680_v48 = vadd.f32 %v678_v46, %v672_v47 }
 0x19e   : > { %v694_v58 = vadd.f32 %v690_v39, %v680_v48 }
 0x1a0   : > { %v708_v55 = vadd.f32 %v704_v53, %v694_v58 }
 0x1a1   : > { %v702_v56 = vpop.permute.xlu0 %701 }
 0x1a2   : > { %711 = vst.msk [vmem:[%s205_s6 + $0x8] sm:$0xff] %vm709_vm3, %v708_v55  ;;  %v707_v2 = vadd.f32 %v702_v56, %v693_v54 }
 0x1a4   : > { %710 = vst.msk [vmem:[%s205_s6] sm:$0xff] %vm709_vm3, %v707_v2 }
 0x1a5   : > { %1009 = shalt.err (!%p1006_p8)
}
 0x1a6   : > { %s1061_s9 = smov 128   ;;  %s1062_s24 = smov 8  }
 0x1a7   : > { %878 = dma.vmem_to_hbm [thread:$0]  (%p1138_p11), %s726_s7, 256, %s728_s4, %s713_s2, %s1061_s9, %s1061_s9, %s1062_s24  }
 0x1a8 PF: > { %s742_s5 = sand.u32 1, %s1040_s14   ;;  %p1445_p9 = scmp.ge.s32.totalorder %s1052_s17, 2 }
 0x1a9   : > { %s743_s10 = scalar_lea.sflag [#allocation6], %s742_s5 }
 0x1aa   : > { %p889_p10 = pnand %p1445_p9, %p1142_p12 }
 0x1ac   : > { %p890_p1 = pneg %p889_p10 }
 0x1ae   : > { %1035 = dma.done.wait (%p890_p1), %s743_s10, 256  }
 0x1af   : > { %1037 = vsyncadd (%p890_p1), %s743_s10, 4294967040  ;;  %p18_p2 = scmp.ge.s32.totalorder %s1111_s19, 4   ;;  %s1446_s14 = smov %s1044_s15 }
 0x1b0   : > { %s1447_s15 = smov %s1048_s16  ;;  %s1448_s16 = smov %s1123_s22 }
 0x1b1   : > { %s1449_s17 = smov %s1111_s19  ;;  %20 = sbr.rel (!%p18_p2) target bundleno = 8 (0x8), region = 88 }
 0x1b6   :  { %749 = vsyncpa [#allocation5], 1 }
 0x1b7   :  { %751 = vsyncpa [#allocation5 + $0x1], 1 }
 0x1b8   :  { %752 = vsyncpa [#allocation6], 1 }
 0x1b9   :  { %754 = vsyncpa [#allocation6 + $0x1], 1 }
 0x1ba   :  { %755 = vsyncpa [#allocation7], 1 }
 0x1bb   :  { %757 = vsyncpa [#allocation7 + $0x1], 1 }

</bundles_post_ra>
